<compile_context>
chip_gen: v7x
topology: tpu7x:2x2x1
jax: 0.10.0
libtpu: 0.0.40
codegen_flags: <defaults>
</compile_context>

<pallas_src>
import functools
import math

import jax
import jax.numpy as jnp
import numpy as np
from jax.experimental import pallas as pl
from jax.experimental.pallas import tpu as pltpu


# ---------------------------------------------------------------------------
# Config (small INR instantiation)
# ---------------------------------------------------------------------------
IN_CHANNELS = 2                                   # (y, x) coords
OUT_CHANNELS = 3
HIDDEN_CHANNELS = 32
HIDDEN_LAYERS = 2
N_FREQS = 10
ENC_CHANNELS = IN_CHANNELS * (2 * N_FREQS + 1)    # 42
FREQ_BANDS = [float(2.0 ** i) for i in range(N_FREQS)]   # logscale=True

assert N_FREQS % 2 == 0
N_GROUP = N_FREQS // 2                             # octaves per anchor group (5)
ANCHOR_FREQ = float(2 ** N_GROUP)                  # 32.0 — second EUP anchor

TILE_MAX = 32 * 1024                               # max pixels (lanes) per grid step


def _round_up(x, m):
    return ((x + m - 1) // m) * m


# ---------------------------------------------------------------------------
# Kernel: generate coords, anchor sin/cos + double-angle octaves, run MLP
# ---------------------------------------------------------------------------
def _inr_kernel(w_ref, out_ref, *, layout, height, width, rows_per_tile,
                num_hidden):
    f32 = jnp.float32
    tile = out_ref.shape[-1]                       # rows_per_tile * width

    def wslice(name):
        r0, (nr, nc) = layout[name]
        return w_ref[r0:r0 + nr, 0:nc]             # static, 8-row-aligned slice

    # ---- in-kernel coordinate generation (exact row-block indexing) -------
    step_h = 2.0 / (height - 1) if height > 1 else 0.0
    step_w = 2.0 / (width - 1) if width > 1 else 0.0
    rows4 = jax.lax.broadcasted_iota(jnp.int32, (4, tile), 0)
    lane = jax.lax.broadcasted_iota(jnp.int32, (4, tile), 1).astype(f32)
    # lane < 32768 so the float div/mod below is exact (+0.5 floor guard).
    rit = jnp.floor((lane + 0.5) / float(width))              # row within tile
    col = lane - rit * float(width)                            # column index
    row0 = (pl.program_id(0) * rows_per_tile).astype(f32)      # tile's first row
    y = (row0 + rit) * step_h - 1.0                            # linspace(-1,1,H)
    x = col * step_w - 1.0                                     # linspace(-1,1,W)
    yx = jnp.where((rows4 & 1) == 0, y, x)                     # rows [y, x, y, x]
    ph = jnp.where(rows4 < 2, yx, yx * ANCHOR_FREQ)            # [y, x, 32y, 32x]
    coords = yx[0:2, :]                                        # (2, tile)

    # ---- positional encoding: 2 EUP anchors + VPU double-angle octaves ----
    s = jnp.sin(ph)                                            # (4, tile)
    c = jnp.cos(ph)

    # ---- layer 0: accumulate W0 column-blocks as octaves are produced -----
    h = jnp.dot(wslice("w0x"), coords, preferred_element_type=f32)   # (32, tile)
    for j in range(N_GROUP):
        if j:   # double the octave: freqs [2^j, 32*2^j] per coordinate channel
            s, c = 2.0 * s * c, (c - s) * (c + s)
        h = h + jnp.dot(wslice(f"w0s{j}"), s, preferred_element_type=f32)
        h = h + jnp.dot(wslice(f"w0c{j}"), c, preferred_element_type=f32)
    h = jnp.maximum(h + wslice("b0"), 0.0)

    # ---- hidden linears + ReLU ---------------------------------------------
    for i in range(num_hidden):
        h = jnp.dot(wslice(f"w{i + 1}"), h, preferred_element_type=f32)
        h = jnp.maximum(h + wslice(f"b{i + 1}"), 0.0)

    # ---- final linear, lane-dense (C, tile) store ---------------------------
    out = jnp.dot(wslice("wf"), h, preferred_element_type=f32) + wslice("bf")
    out_ref[...] = out.astype(out_ref.dtype)


# ---------------------------------------------------------------------------
# Host-side param packing: one f32 buffer, 8-aligned row segments
# ---------------------------------------------------------------------------
def _pack_params(params):
    """params: list of (W (in,out), b (out,)) in original encoding order."""
    (w0, b0) = params[0]
    hidden = params[1:-1]
    (wf, bf) = params[-1]

    w0t = np.asarray(w0, np.float32).T             # (HIDDEN, ENC_CHANNELS)
    # Original encoding column order: [y, x] + per-octave-k [sin(y,x), cos(y,x)].
    entries = [("w0x", w0t[:, :IN_CHANNELS])]
    for j in range(N_GROUP):
        sc = [2 + 4 * j, 3 + 4 * j,
              2 + 4 * (j + N_GROUP), 3 + 4 * (j + N_GROUP)]   # octaves j, j+5
        entries.append((f"w0s{j}", w0t[:, sc]))
        entries.append((f"w0c{j}", w0t[:, [k + 2 for k in sc]]))
    entries.append(("b0", np.asarray(b0, np.float32).reshape(-1, 1)))
    for i, (w, b) in enumerate(hidden):
        entries.append((f"w{i + 1}", np.asarray(w, np.float32).T))
        entries.append((f"b{i + 1}", np.asarray(b, np.float32).reshape(-1, 1)))
    entries.append(("wf", np.asarray(wf, np.float32).T))
    entries.append(("bf", np.asarray(bf, np.float32).reshape(-1, 1)))

    ncols = max(a.shape[1] for _, a in entries)    # 32
    layout, blocks, r = {}, [], 0
    for name, a in entries:
        nr, nc = a.shape
        layout[name] = (r, (nr, nc))
        pad_r = _round_up(nr, 8)                   # sublane-aligned segments
        blk = np.zeros((pad_r, ncols), np.float32)
        blk[:nr, :nc] = a
        blocks.append(blk)
        r += pad_r
    packed = jnp.asarray(np.concatenate(blocks, axis=0))
    return packed, layout


# ---------------------------------------------------------------------------
# Tile / VMEM selection
# ---------------------------------------------------------------------------
def _pick_vmem_limit():
    # 96 MiB on 128-MiB parts (v5e/v6e); ~48 MiB on v7x (64 MiB physical).
    try:
        cap = int(pltpu.get_tpu_info().vmem_capacity_bytes)
    except Exception:
        cap = 64 << 20          # conservative fallback: assume the smallest part
    return min(96 << 20, (cap * 3) // 4)


def _choose_rows_per_tile(height, width, tile_max):
    """Rows per grid step. Prefers exact (divisor-of-H, 128-multiple) tiles."""
    exact = [d for d in range(1, height + 1)
             if height % d == 0 and (d * width) % 128 == 0
             and d * width <= tile_max]
    if exact:
        best = exact[-1]
        if height // best < 4:
            # Prefer >= 4 grid steps (v7x: 2 per core, pipelined with output
            # DMA) as long as tiles stay >= 4096 lanes.
            for d in reversed(exact):
                if height // d >= 4 and d * width >= 4096:
                    return d
        return best
    if height * width <= tile_max:
        return height            # single full block: (8,128) rule waived
    # Rare fallback (awkward W): pad H; host slices the tail off.
    # TODO(synk): very wide odd-width images would want a 2-D (row, col) grid.
    g = 128 // math.gcd(width, 128)
    rows = g * max(1, tile_max // (g * width))
    return min(rows, _round_up(height, g))


# ---------------------------------------------------------------------------
# pallas_call wrapper
# ---------------------------------------------------------------------------
def inr_pallas(params, height, width, *, tile_max=TILE_MAX):
    n = height * width
    vmem_limit = _pick_vmem_limit()
    # Pessimistic ~1 KiB/lane live-f32 budget keeps the tile clear of the limit.
    lanes_budget = max(1024, (vmem_limit - (4 << 20)) // 1024)
    tile_max = min(tile_max, lanes_budget)

    rows_per_tile = _choose_rows_per_tile(height, width, tile_max)
    grid = -(-height // rows_per_tile)             # cdiv
    h_pad = grid * rows_per_tile
    tile = rows_per_tile * width

    packed, layout = _pack_params(params)
    num_hidden = len(params) - 2

    kernel = functools.partial(
        _inr_kernel, layout=layout, height=height, width=width,
        rows_per_tile=rows_per_tile, num_hidden=num_hidden)

    out = pl.pallas_call(
        kernel,
        out_shape=jax.ShapeDtypeStruct((OUT_CHANNELS, h_pad * width), jnp.float32),
        grid_spec=pltpu.PrefetchScalarGridSpec(
            num_scalar_prefetch=0,
            grid=(grid,),
            in_specs=[pl.BlockSpec(packed.shape, lambda i: (0, 0))],
            out_specs=pl.BlockSpec((OUT_CHANNELS, tile), lambda i: (0, i)),
        ),
        compiler_params=pltpu.CompilerParams(
            dimension_semantics=("parallel",),
            vmem_limit_bytes=vmem_limit,
        ),
    )(packed)

    if h_pad != height:                            # only on the rare fallback path
        out = out[:, :n]
    return out                                     # (OUT_CHANNELS, H*W)


def inr_forward(image, params):
    """image: NCHW (only H, W are used — stands in for image_height/width).

    Returns (1, OUT_CHANNELS, H, W), i.e. rearrange '(h w) c -> () c h w'.
    """
    height, width = image.shape[-2], image.shape[-1]
    out_flat = inr_pallas(params, height, width)
    return out_flat.reshape(OUT_CHANNELS, height, width)[None]


# ---------------------------------------------------------------------------
# Params + pure-JAX reference
# ---------------------------------------------------------------------------
def init_params(key):
    """PyTorch-Linear-style init: U(-1/sqrt(fan_in), +1/sqrt(fan_in))."""
    dims = [ENC_CHANNELS] + [HIDDEN_CHANNELS] * (HIDDEN_LAYERS + 1) + [OUT_CHANNELS]
    params = []
    for fan_in, fan_out in zip(dims[:-1], dims[1:]):
        key, kw, kb = jax.random.split(key, 3)
        bound = 1.0 / np.sqrt(fan_in)
        w = jax.random.uniform(kw, (fan_in, fan_out), jnp.float32, -bound, bound)
        b = jax.random.uniform(kb, (fan_out,), jnp.float32, -bound, bound)
        params.append((w, b))
    return params


def inr_reference(image, params):
    height, width = image.shape[-2], image.shape[-1]
    sh = 2.0 / (height - 1) if height > 1 else 0.0
    sw = 2.0 / (width - 1) if width > 1 else 0.0
    ys = jnp.arange(height, dtype=jnp.float32) * sh - 1.0      # linspace(-1, 1, H)
    xs = jnp.arange(width, dtype=jnp.float32) * sw - 1.0       # linspace(-1, 1, W)
    gy, gx = jnp.meshgrid(ys, xs, indexing="ij")
    coords = jnp.stack([gy, gx], axis=-1).reshape(-1, IN_CHANNELS)   # (H*W, 2)

    feats = [coords]
    for f in FREQ_BANDS:
        feats += [jnp.sin(f * coords), jnp.cos(f * coords)]
    h = jnp.concatenate(feats, axis=-1)                           # (H*W, 42)
    for i, (w, b) in enumerate(params):
        h = jnp.dot(h, w, precision=jax.lax.Precision.HIGHEST) + b
        if i < len(params) - 1:
            h = jnp.maximum(h, 0.0)
    return h.reshape(height, width, OUT_CHANNELS).transpose(2, 0, 1)[None]


if __name__ == "__main__":
    key = jax.random.PRNGKey(0)
    k_img, k_par = jax.random.split(key)

    params = init_params(k_par)

    # Small shape consistent with the module (only H, W of the image are used).
    image = jax.random.normal(k_img, (2, 4, 16, 16), jnp.float32)
    out = jax.block_until_ready(inr_forward(image, params))
    ref = inr_reference(image, params)
    assert out.shape == (1, OUT_CHANNELS, 16, 16), out.shape
    np.testing.assert_allclose(np.asarray(out), np.asarray(ref), rtol=1e-4, atol=1e-4)

    # Module-default 256x256 grid exercises the multi-step (grid=4) path.
    image2 = jnp.zeros((1, OUT_CHANNELS, 256, 256), jnp.float32)
    out2 = jax.block_until_ready(inr_forward(image2, params))
    ref2 = inr_reference(image2, params)
    np.testing.assert_allclose(np.asarray(out2), np.asarray(ref2), rtol=1e-4, atol=1e-4)

    print("KERNEL_OK")
</pallas_src>

<mosaic_0001>
module attributes {stable_mosaic.version = 11 : i64} {
  func.func @_inr_kernel(%arg0: i32, %arg1: memref<528x32xf32, #tpu.memory_space<vmem>>, %arg2: memref<3x256xf32, #tpu.memory_space<vmem>>) attributes {dimension_semantics = [#tpu.dimension_semantics<parallel>], iteration_bounds = array<i64: 1>, scalar_prefetch = 0 : i64, scratch_operands = 0 : i64, tpu.core_type = #tpu.core_type<tc>, window_params = [{pipeline_mode = #tpu.pipeline_mode<synchronous>, transform_indices = @transform_0, window_bounds = array<i64: 528, 32>}, {transform_indices = @transform_1, window_bounds = array<i64: 3, 256>}]} {
    %0 = tpu.iota {dimensions = array<i32: 0>} : vector<4x256xi32>
    %1 = tpu.iota {dimensions = array<i32: 1>} : vector<4x256xi32>
    %2 = arith.sitofp %1 : vector<4x256xi32> to vector<4x256xf32>
    %cst = arith.constant 5.000000e-01 : f32
    %3 = vector.broadcast %cst : f32 to vector<4x256xf32>
    %4 = arith.addf %2, %3 : vector<4x256xf32>
    %cst_0 = arith.constant 1.600000e+01 : f32
    %5 = vector.broadcast %cst_0 : f32 to vector<4x256xf32>
    %6 = arith.divf %4, %5 : vector<4x256xf32>
    %7 = math.floor %6 : vector<4x256xf32>
    %cst_1 = arith.constant 1.600000e+01 : f32
    %8 = vector.broadcast %cst_1 : f32 to vector<4x256xf32>
    %9 = arith.mulf %7, %8 : vector<4x256xf32>
    %10 = arith.subf %2, %9 : vector<4x256xf32>
    %c16_i32 = arith.constant 16 : i32
    %11 = arith.muli %arg0, %c16_i32 : i32
    %12 = arith.sitofp %11 : i32 to f32
    %13 = vector.broadcast %12 : f32 to vector<4x256xf32>
    %14 = arith.addf %13, %7 : vector<4x256xf32>
    %cst_2 = arith.constant 0.13333334 : f32
    %15 = vector.broadcast %cst_2 : f32 to vector<4x256xf32>
    %16 = arith.mulf %14, %15 : vector<4x256xf32>
    %cst_3 = arith.constant 1.000000e+00 : f32
    %17 = vector.broadcast %cst_3 : f32 to vector<4x256xf32>
    %18 = arith.subf %16, %17 : vector<4x256xf32>
    %cst_4 = arith.constant 0.13333334 : f32
    %19 = vector.broadcast %cst_4 : f32 to vector<4x256xf32>
    %20 = arith.mulf %10, %19 : vector<4x256xf32>
    %cst_5 = arith.constant 1.000000e+00 : f32
    %21 = vector.broadcast %cst_5 : f32 to vector<4x256xf32>
    %22 = arith.subf %20, %21 : vector<4x256xf32>
    %c1_i32 = arith.constant 1 : i32
    %23 = vector.broadcast %c1_i32 : i32 to vector<4x256xi32>
    %24 = arith.andi %0, %23 : vector<4x256xi32>
    %c0_i32 = arith.constant 0 : i32
    %25 = vector.broadcast %c0_i32 : i32 to vector<4x256xi32>
    %26 = arith.cmpi eq, %24, %25 : vector<4x256xi32>
    %27 = arith.select %26, %18, %22 : vector<4x256xi1>, vector<4x256xf32>
    %c2_i32 = arith.constant 2 : i32
    %28 = vector.broadcast %c2_i32 : i32 to vector<4x256xi32>
    %29 = arith.cmpi slt, %0, %28 : vector<4x256xi32>
    %cst_6 = arith.constant 3.200000e+01 : f32
    %30 = vector.broadcast %cst_6 : f32 to vector<4x256xf32>
    %31 = arith.mulf %27, %30 : vector<4x256xf32>
    %32 = arith.select %29, %27, %31 : vector<4x256xi1>, vector<4x256xf32>
    %33 = vector.extract_strided_slice %27 {offsets = [0, 0], sizes = [2, 256], strides = [1, 1]} : vector<4x256xf32> to vector<2x256xf32>
    %34 = math.sin %32 : vector<4x256xf32>
    %35 = math.cos %32 : vector<4x256xf32>
    %c0 = arith.constant 0 : index
    %c0_7 = arith.constant 0 : index
    %36 = vector.load %arg1[%c0, %c0_7] : memref<528x32xf32, #tpu.memory_space<vmem>>, vector<32x2xf32>
    %cst_8 = arith.constant dense<0.000000e+00> : vector<32x256xf32>
    %37 = tpu.matmul %36, %33, %cst_8 {dimension_numbers = #tpu.dot_dimension_numbers<[1], [0], [0], [1], [0, 0, 1, 1], [], []>} : vector<32x2xf32>, vector<2x256xf32>, vector<32x256xf32> -> vector<32x256xf32>
    %c32 = arith.constant 32 : index
    %c0_9 = arith.constant 0 : index
    %38 = vector.load %arg1[%c32, %c0_9] : memref<528x32xf32, #tpu.memory_space<vmem>>, vector<32x4xf32>
    %cst_10 = arith.constant dense<0.000000e+00> : vector<32x256xf32>
    %39 = tpu.matmul %38, %34, %cst_10 {dimension_numbers = #tpu.dot_dimension_numbers<[1], [0], [0], [1], [0, 0, 1, 1], [], []>} : vector<32x4xf32>, vector<4x256xf32>, vector<32x256xf32> -> vector<32x256xf32>
    %40 = arith.addf %37, %39 : vector<32x256xf32>
    %c64 = arith.constant 64 : index
    %c0_11 = arith.constant 0 : index
    %41 = vector.load %arg1[%c64, %c0_11] : memref<528x32xf32, #tpu.memory_space<vmem>>, vector<32x4xf32>
    %cst_12 = arith.constant dense<0.000000e+00> : vector<32x256xf32>
    %42 = tpu.matmul %41, %35, %cst_12 {dimension_numbers = #tpu.dot_dimension_numbers<[1], [0], [0], [1], [0, 0, 1, 1], [], []>} : vector<32x4xf32>, vector<4x256xf32>, vector<32x256xf32> -> vector<32x256xf32>
    %43 = arith.addf %40, %42 : vector<32x256xf32>
    %cst_13 = arith.constant 2.000000e+00 : f32
    %44 = vector.broadcast %cst_13 : f32 to vector<4x256xf32>
    %45 = arith.mulf %44, %34 : vector<4x256xf32>
    %46 = arith.mulf %45, %35 : vector<4x256xf32>
    %47 = arith.subf %35, %34 : vector<4x256xf32>
    %48 = arith.addf %35, %34 : vector<4x256xf32>
    %49 = arith.mulf %47, %48 : vector<4x256xf32>
    %c96 = arith.constant 96 : index
    %c0_14 = arith.constant 0 : index
    %50 = vector.load %arg1[%c96, %c0_14] : memref<528x32xf32, #tpu.memory_space<vmem>>, vector<32x4xf32>
    %cst_15 = arith.constant dense<0.000000e+00> : vector<32x256xf32>
    %51 = tpu.matmul %50, %46, %cst_15 {dimension_numbers = #tpu.dot_dimension_numbers<[1], [0], [0], [1], [0, 0, 1, 1], [], []>} : vector<32x4xf32>, vector<4x256xf32>, vector<32x256xf32> -> vector<32x256xf32>
    %52 = arith.addf %43, %51 : vector<32x256xf32>
    %c128 = arith.constant 128 : index
    %c0_16 = arith.constant 0 : index
    %53 = vector.load %arg1[%c128, %c0_16] : memref<528x32xf32, #tpu.memory_space<vmem>>, vector<32x4xf32>
    %cst_17 = arith.constant dense<0.000000e+00> : vector<32x256xf32>
    %54 = tpu.matmul %53, %49, %cst_17 {dimension_numbers = #tpu.dot_dimension_numbers<[1], [0], [0], [1], [0, 0, 1, 1], [], []>} : vector<32x4xf32>, vector<4x256xf32>, vector<32x256xf32> -> vector<32x256xf32>
    %55 = arith.addf %52, %54 : vector<32x256xf32>
    %cst_18 = arith.constant 2.000000e+00 : f32
    %56 = vector.broadcast %cst_18 : f32 to vector<4x256xf32>
    %57 = arith.mulf %56, %46 : vector<4x256xf32>
    %58 = arith.mulf %57, %49 : vector<4x256xf32>
    %59 = arith.subf %49, %46 : vector<4x256xf32>
    %60 = arith.addf %49, %46 : vector<4x256xf32>
    %61 = arith.mulf %59, %60 : vector<4x256xf32>
    %c160 = arith.constant 160 : index
    %c0_19 = arith.constant 0 : index
    %62 = vector.load %arg1[%c160, %c0_19] : memref<528x32xf32, #tpu.memory_space<vmem>>, vector<32x4xf32>
    %cst_20 = arith.constant dense<0.000000e+00> : vector<32x256xf32>
    %63 = tpu.matmul %62, %58, %cst_20 {dimension_numbers = #tpu.dot_dimension_numbers<[1], [0], [0], [1], [0, 0, 1, 1], [], []>} : vector<32x4xf32>, vector<4x256xf32>, vector<32x256xf32> -> vector<32x256xf32>
    %64 = arith.addf %55, %63 : vector<32x256xf32>
    %c192 = arith.constant 192 : index
    %c0_21 = arith.constant 0 : index
    %65 = vector.load %arg1[%c192, %c0_21] : memref<528x32xf32, #tpu.memory_space<vmem>>, vector<32x4xf32>
    %cst_22 = arith.constant dense<0.000000e+00> : vector<32x256xf32>
    %66 = tpu.matmul %65, %61, %cst_22 {dimension_numbers = #tpu.dot_dimension_numbers<[1], [0], [0], [1], [0, 0, 1, 1], [], []>} : vector<32x4xf32>, vector<4x256xf32>, vector<32x256xf32> -> vector<32x256xf32>
    %67 = arith.addf %64, %66 : vector<32x256xf32>
    %cst_23 = arith.constant 2.000000e+00 : f32
    %68 = vector.broadcast %cst_23 : f32 to vector<4x256xf32>
    %69 = arith.mulf %68, %58 : vector<4x256xf32>
    %70 = arith.mulf %69, %61 : vector<4x256xf32>
    %71 = arith.subf %61, %58 : vector<4x256xf32>
    %72 = arith.addf %61, %58 : vector<4x256xf32>
    %73 = arith.mulf %71, %72 : vector<4x256xf32>
    %c224 = arith.constant 224 : index
    %c0_24 = arith.constant 0 : index
    %74 = vector.load %arg1[%c224, %c0_24] : memref<528x32xf32, #tpu.memory_space<vmem>>, vector<32x4xf32>
    %cst_25 = arith.constant dense<0.000000e+00> : vector<32x256xf32>
    %75 = tpu.matmul %74, %70, %cst_25 {dimension_numbers = #tpu.dot_dimension_numbers<[1], [0], [0], [1], [0, 0, 1, 1], [], []>} : vector<32x4xf32>, vector<4x256xf32>, vector<32x256xf32> -> vector<32x256xf32>
    %76 = arith.addf %67, %75 : vector<32x256xf32>
    %c256 = arith.constant 256 : index
    %c0_26 = arith.constant 0 : index
    %77 = vector.load %arg1[%c256, %c0_26] : memref<528x32xf32, #tpu.memory_space<vmem>>, vector<32x4xf32>
    %cst_27 = arith.constant dense<0.000000e+00> : vector<32x256xf32>
    %78 = tpu.matmul %77, %73, %cst_27 {dimension_numbers = #tpu.dot_dimension_numbers<[1], [0], [0], [1], [0, 0, 1, 1], [], []>} : vector<32x4xf32>, vector<4x256xf32>, vector<32x256xf32> -> vector<32x256xf32>
    %79 = arith.addf %76, %78 : vector<32x256xf32>
    %cst_28 = arith.constant 2.000000e+00 : f32
    %80 = vector.broadcast %cst_28 : f32 to vector<4x256xf32>
    %81 = arith.mulf %80, %70 : vector<4x256xf32>
    %82 = arith.mulf %81, %73 : vector<4x256xf32>
    %83 = arith.subf %73, %70 : vector<4x256xf32>
    %84 = arith.addf %73, %70 : vector<4x256xf32>
    %85 = arith.mulf %83, %84 : vector<4x256xf32>
    %c288 = arith.constant 288 : index
    %c0_29 = arith.constant 0 : index
    %86 = vector.load %arg1[%c288, %c0_29] : memref<528x32xf32, #tpu.memory_space<vmem>>, vector<32x4xf32>
    %cst_30 = arith.constant dense<0.000000e+00> : vector<32x256xf32>
    %87 = tpu.matmul %86, %82, %cst_30 {dimension_numbers = #tpu.dot_dimension_numbers<[1], [0], [0], [1], [0, 0, 1, 1], [], []>} : vector<32x4xf32>, vector<4x256xf32>, vector<32x256xf32> -> vector<32x256xf32>
    %88 = arith.addf %79, %87 : vector<32x256xf32>
    %c320 = arith.constant 320 : index
    %c0_31 = arith.constant 0 : index
    %89 = vector.load %arg1[%c320, %c0_31] : memref<528x32xf32, #tpu.memory_space<vmem>>, vector<32x4xf32>
    %cst_32 = arith.constant dense<0.000000e+00> : vector<32x256xf32>
    %90 = tpu.matmul %89, %85, %cst_32 {dimension_numbers = #tpu.dot_dimension_numbers<[1], [0], [0], [1], [0, 0, 1, 1], [], []>} : vector<32x4xf32>, vector<4x256xf32>, vector<32x256xf32> -> vector<32x256xf32>
    %91 = arith.addf %88, %90 : vector<32x256xf32>
    %c352 = arith.constant 352 : index
    %c0_33 = arith.constant 0 : index
    %92 = vector.load %arg1[%c352, %c0_33] : memref<528x32xf32, #tpu.memory_space<vmem>>, vector<32x1xf32>
    %93 = vector.broadcast %92 : vector<32x1xf32> to vector<32x256xf32>
    %94 = arith.addf %91, %93 : vector<32x256xf32>
    %cst_34 = arith.constant 0.000000e+00 : f32
    %95 = vector.broadcast %cst_34 : f32 to vector<32x256xf32>
    %96 = arith.maximumf %94, %95 : vector<32x256xf32>
    %c384 = arith.constant 384 : index
    %c0_35 = arith.constant 0 : index
    %97 = vector.load %arg1[%c384, %c0_35] : memref<528x32xf32, #tpu.memory_space<vmem>>, vector<32x32xf32>
    %cst_36 = arith.constant dense<0.000000e+00> : vector<32x256xf32>
    %98 = tpu.matmul %97, %96, %cst_36 {dimension_numbers = #tpu.dot_dimension_numbers<[1], [0], [0], [1], [0, 0, 1, 1], [], []>} : vector<32x32xf32>, vector<32x256xf32>, vector<32x256xf32> -> vector<32x256xf32>
    %c416 = arith.constant 416 : index
    %c0_37 = arith.constant 0 : index
    %99 = vector.load %arg1[%c416, %c0_37] : memref<528x32xf32, #tpu.memory_space<vmem>>, vector<32x1xf32>
    %100 = vector.broadcast %99 : vector<32x1xf32> to vector<32x256xf32>
    %101 = arith.addf %98, %100 : vector<32x256xf32>
    %cst_38 = arith.constant 0.000000e+00 : f32
    %102 = vector.broadcast %cst_38 : f32 to vector<32x256xf32>
    %103 = arith.maximumf %101, %102 : vector<32x256xf32>
    %c448 = arith.constant 448 : index
    %c0_39 = arith.constant 0 : index
    %104 = vector.load %arg1[%c448, %c0_39] : memref<528x32xf32, #tpu.memory_space<vmem>>, vector<32x32xf32>
    %cst_40 = arith.constant dense<0.000000e+00> : vector<32x256xf32>
    %105 = tpu.matmul %104, %103, %cst_40 {dimension_numbers = #tpu.dot_dimension_numbers<[1], [0], [0], [1], [0, 0, 1, 1], [], []>} : vector<32x32xf32>, vector<32x256xf32>, vector<32x256xf32> -> vector<32x256xf32>
    %c480 = arith.constant 480 : index
    %c0_41 = arith.constant 0 : index
    %106 = vector.load %arg1[%c480, %c0_41] : memref<528x32xf32, #tpu.memory_space<vmem>>, vector<32x1xf32>
    %107 = vector.broadcast %106 : vector<32x1xf32> to vector<32x256xf32>
    %108 = arith.addf %105, %107 : vector<32x256xf32>
    %cst_42 = arith.constant 0.000000e+00 : f32
    %109 = vector.broadcast %cst_42 : f32 to vector<32x256xf32>
    %110 = arith.maximumf %108, %109 : vector<32x256xf32>
    %c512 = arith.constant 512 : index
    %c0_43 = arith.constant 0 : index
    %111 = vector.load %arg1[%c512, %c0_43] : memref<528x32xf32, #tpu.memory_space<vmem>>, vector<3x32xf32>
    %cst_44 = arith.constant dense<0.000000e+00> : vector<3x256xf32>
    %112 = tpu.matmul %111, %110, %cst_44 {dimension_numbers = #tpu.dot_dimension_numbers<[1], [0], [0], [1], [0, 0, 1, 1], [], []>} : vector<3x32xf32>, vector<32x256xf32>, vector<3x256xf32> -> vector<3x256xf32>
    %c520 = arith.constant 520 : index
    %c0_45 = arith.constant 0 : index
    %113 = vector.load %arg1[%c520, %c0_45] : memref<528x32xf32, #tpu.memory_space<vmem>>, vector<3x1xf32>
    %114 = vector.broadcast %113 : vector<3x1xf32> to vector<3x256xf32>
    %115 = arith.addf %112, %114 : vector<3x256xf32>
    %c0_46 = arith.constant 0 : index
    %c0_47 = arith.constant 0 : index
    %116 = vector.load %arg2[%c0_46, %c0_47] : memref<3x256xf32, #tpu.memory_space<vmem>>, vector<3x256xf32>
    tpu.vector_store %arg2[%c0_46, %c0_47], %115 {strides = array<i32>} : memref<3x256xf32, #tpu.memory_space<vmem>>, vector<3x256xf32>,
    return
  }
  func.func @transform_0(%arg0: i32) -> (i32, i32) {
    %c0_i32 = arith.constant 0 : i32
    %c0_i32_0 = arith.constant 0 : i32
    %c0_i32_1 = arith.constant 0 : i32
    return %c0_i32, %c0_i32_0 : i32, i32
  }
  func.func @transform_1(%arg0: i32) -> (i32, i32) {
    %c0_i32 = arith.constant 0 : i32
    %c0_i32_0 = arith.constant 0 : i32
    return %c0_i32, %arg0 : i32, i32
  }
}

</mosaic_0001>

<bundles_post_ra>
// kernel: tpu_custom_call.1
= control target key start
LH: loop header
LB: loop body
LE: loop exit
PB: predicated region body
PF: predicated region fallthrough
CT: control target
= control target key end

     0   :  { %v9_v0 = vlaneseq  ;;  %v2465_v2 = vmov 0.0   ;;  %s2974_s0 = inlined_call_operand.vmem [shape: f32[528,32], index: 0, kind: input, shape index: {}]   ;;  %s2975_s1 = inlined_call_operand.hbm [shape: f32[3,256], index: 1, kind: output, shape index: {}]  }
   0x1   :  { %555 = vmatprep.mubr.f32.mxu1 %v2465_v2  ;;  %1023 = vmatprep.mubr.f32.mxu0 %v2465_v2 }
   0x2   :  { %v12_v1 = vand.u32 127, %v9_v0 }
   0x4   :  { %v13_v3 = vadd.s32 128, %v12_v1  ;;  %v14_v4 = vcvt.s32.f32 %v12_v1 }
   0x5   :  { %6 = vsyncpa [#allocation3], 0  ;;  %v10_v9 = vshrl.u32 %v9_v0, 7  ;;  %v2466_v54 = vmov 683565275   ;;  %s2473_s22 = smov [#allocation2]  }
   0x6   :  { %v15_v5 = vcvt.s32.f32 %v13_v3  ;;  %v16_v6 = vadd.f32 0.5, %v14_v4  ;;  %v2467_v56 = vmov 2475754826   ;;  %v2468_v61 = vmov 2131351028   ;;  %s2207_s23 = sshll.u32 %s2473_s22, 4  ;;  %s2208_s23 = int_to_ptr.vmem [resolvable:$true] %s2207_s23 }
   0x7   :  { %v40_v15 = vand.u32 1, %v10_v9  ;;  %vm44_vm1 = vcmp.lt.s32.totalorder %v10_v9, 2  ;;  %v2469_v63 = vmov 2102212464   ;;  %v2470_v1 = vmov 920167782   ;;  %p2446_p1 = scmp.lt.s32.totalorder %s2208_s23, %s2208_s23 }
   0x8   :  { %v17_v7 = vadd.f32 0.5, %v15_v5  ;;  %v19_v8 = vmul.f32 0.0625, %v16_v6  ;;  %s2441_s24 = scalar_lea.vmem %s2208_s23, 128 }
   0x9   :  { %vm41_vm0 = vcmp.eq.s32.totalorder %v40_v15, 0  ;;  %p2442_p0 = scmp.ne.s32.totalorder %s2208_s23, %s2441_s24  ;;  %p2447_p2 = scmp.lt.s32.totalorder %s2441_s24, %s2441_s24 }
   0xa   :  { %v20_v10 = vmul.f32 0.0625, %v17_v7  ;;  %v21_v11 = vfloor.f32 %v19_v8 }
   0xb   :  { %p2448_p3 = por %p2447_p2, %p2446_p1 }
   0xc   :  { %v22_v12 = vfloor.f32 %v20_v10  ;;  %v23_v13 = vmul.f32 16.0, %v21_v11  ;;  %v32_v14 = vmul.f32 0.13333334, %v21_v11  ;;  %v2471_v10 = vmov 1326507024  }
   0xd   :  { %p2449_p4 = pnand %p2448_p3, %p2442_p0 }
   0xe   :  { %v24_v16 = vmul.f32 16.0, %v22_v12  ;;  %v33_v17 = vmul.f32 0.13333334, %v22_v12  ;;  %v25_v18 = vsub.f32 %v14_v4, %v23_v13  ;;  %v2215_v20 = vadd.f32 -1.0, %v32_v14 }
  0x10   :  { %v26_v19 = vsub.f32 %v15_v5, %v24_v16  ;;  %v36_v21 = vmul.f32 0.13333334, %v25_v18  ;;  %v2216_v22 = vadd.f32 -1.0, %v33_v17 }
  0x12   :  { %v37_v23 = vmul.f32 0.13333334, %v26_v19  ;;  %v2217_v24 = vadd.f32 -1.0, %v36_v21 }
  0x14   :  { %v2218_v25 = vadd.f32 -1.0, %v37_v23  ;;  %v2486_v26 = vsel %vm41_vm0, %v2215_v20, %v2217_v24 }
  0x15   :  { %v45_v27 = vmul.f32 32.0, %v2486_v26 }
  0x16   :  { %v2489_v28 = vsel %vm41_vm0, %v2216_v22, %v2218_v25 }
  0x17   :  { %v46_v29 = vmul.f32 32.0, %v2489_v28  ;;  %v2493_v30 = vsel %vm44_vm1, %v2486_v26, %v45_v27 }
  0x18   :  { %v52_v31 = vand.u32 2139095040, %v2493_v30  ;;  %v49_v38 = vand.u32 2147483647, %v2493_v30 }
  0x19   :  { %v2497_v32 = vsel %vm44_vm1, %v2489_v28, %v46_v29 }
  0x1a   :  { %v153_v33 = vand.u32 2147483647, %v2497_v32  ;;  %v156_v34 = vand.u32 2139095040, %v2497_v32  ;;  %v53_v35 = vshrl.u32 %v52_v31, 23  ;;  %v2506_v44 = vand.u32 8388607, %v49_v38 }
  0x1b   :  { %vm155_vm0 = vcmp.lt.s32.totalorder %v2497_v32, 0 }
  0x1c   :  { %v157_v36 = vshrl.u32 %v156_v34, 23  ;;  %v160_v37 = vand.u32 8388607, %v153_v33  ;;  %v2219_v39 = vadd.s32 4294967169, %v53_v35  ;;  %v57_v51 = vor.u32 8388608, %v2506_v44 }
  0x1d   :  { %vm154_vm1 = vcmp.le.f32.partialorder %v153_v33, 0.7853982 }
  0x1e   :  { %v2223_v40 = vadd.s32 4294967169, %v157_v36  ;;  %v59_v41 = vadd.s32 1, %v2219_v39  ;;  %v161_v42 = vor.u32 8388608, %v160_v37 }
  0x20   :  { %v163_v43 = vadd.s32 1, %v2223_v40  ;;  %vm60_vm2 = vcmp.gt.s32.totalorder %v59_v41, 0  ;;  %v2508_v50 = vshll.u32 %v161_v42, 8 }
  0x21   :  { %v61_v45 = vsel %vm60_vm2, %v59_v41, 0  ;;  %vm51_vm2 = vcmp.lt.s32.totalorder %v2493_v30, 0 }
  0x22   :  { %vm164_vm3 = vcmp.gt.s32.totalorder %v163_v43, 0  ;;  %v63_v47 = vand.u32 31, %v61_v45  ;;  %v2511_v52 = vshrl.u32 %v61_v45, 5 }
  0x23   :  { %v165_v46 = vsel %vm164_vm3, %v163_v43, 0  ;;  %vm50_vm3 = vcmp.le.f32.partialorder %v49_v38, 0.7853982  ;;  %v1800_v38 = vld [vmem:[%s2974_s0 + $0x160] sm:$0xff] }
  0x24   :  { %v166_v48 = vshrl.u32 %v165_v46, 5  ;;  %v167_v49 = vand.u32 31, %v165_v46  ;;  %v64_v53 = vsub.s32 32, %v63_v47  ;;  %v66_v55 = vshll.u32 %v2466_v54, %v63_v47 }
  0x25   :  { %v69_v57 = vshll.u32 %v2467_v56, %v63_v47  ;;  %v72_v4 = vshll.u32 %v2468_v61, %v63_v47  ;;  %v75_v46 = vshll.u32 %v2469_v63, %v63_v47  ;;  %vm81_vm8 = vcmp.lt.s32.totalorder %v2511_v52, 1 }
  0x26   :  { %v168_v58 = vsub.s32 32, %v167_v49  ;;  %v170_v59 = vshll.u32 %v2466_v54, %v167_v49  ;;  %v173_v60 = vshll.u32 %v2467_v56, %v167_v49  ;;  %v176_v62 = vshll.u32 %v2468_v61, %v167_v49 }
  0x27   :  { %v179_v0 = vshll.u32 %v2469_v63, %v167_v49  ;;  %v182_v3 = vshll.u32 %v2470_v1, %v167_v49  ;;  %vm185_vm4 = vcmp.lt.s32.totalorder %v166_v48, 1  ;;  %vm186_vm5 = vcmp.lt.s32.totalorder %v166_v48, 2 }
  0x28   :  { %v169_v5 = vshrl.u32 %v2466_v54, %v168_v58  ;;  %v171_v6 = vshrl.u32 %v2467_v56, %v168_v58  ;;  %v174_v7 = vshrl.u32 %v2468_v61, %v168_v58  ;;  %v177_v8 = vshrl.u32 %v2469_v63, %v168_v58 }
  0x29   :  { %v180_v9 = vshrl.u32 %v2470_v1, %v168_v58  ;;  %v183_v11 = vshrl.u32 %v2471_v10, %v168_v58  ;;  %vm187_vm6 = vcmp.lt.s32.totalorder %v166_v48, 3  ;;  %vm188_vm7 = vcmp.lt.s32.totalorder %v166_v48, 4 }
  0x2a   :  { %v172_v12 = vor.u32 %v171_v6, %v170_v59  ;;  %v175_v13 = vor.u32 %v174_v7, %v173_v60  ;;  %v178_v14 = vor.u32 %v177_v8, %v176_v62  ;;  %v67_v17 = vshrl.u32 %v2467_v56, %v64_v53 }
  0x2b   :  { %v181_v15 = vor.u32 %v180_v9, %v179_v0  ;;  %v184_v16 = vor.u32 %v183_v11, %v182_v3  ;;  %v70_v18 = vshrl.u32 %v2468_v61, %v64_v53  ;;  %v65_v27 = vshrl.u32 %v2466_v54, %v64_v53 }
  0x2c   :  { %v189_v19 = vsel %vm185_vm4, %v169_v5, %v172_v12  ;;  %v190_v20 = vsel %vm188_vm7, %v178_v14, 2102212464  ;;  %v193_v21 = vsel %vm185_vm4, %v172_v12, %v175_v13  ;;  %v197_v22 = vsel %vm185_vm4, %v175_v13, %v178_v14 }
  0x2d   :  { %v191_v23 = vsel %vm187_vm6, %v175_v13, %v190_v20  ;;  %v194_v24 = vsel %vm188_vm7, %v181_v15, 920167782  ;;  %v198_v25 = vsel %vm188_vm7, %v184_v16, 1326507024  ;;  %v68_v35 = vor.u32 %v67_v17, %v66_v55 }
  0x2e   :  { %v192_v29 = vsel %vm186_vm5, %v189_v19, %v191_v23  ;;  %v195_v31 = vsel %vm187_vm6, %v178_v14, %v194_v24  ;;  %v199_v34 = vsel %vm187_vm6, %v181_v15, %v198_v25  ;;  %v71_v39 = vor.u32 %v70_v18, %v69_v57 }
  0x2f   :  { %v196_v36 = vsel %vm186_vm5, %v193_v21, %v195_v31  ;;  %v200_v37 = vsel %vm186_vm5, %v197_v22, %v199_v34  ;;  %v73_v40 = vshrl.u32 %v2469_v63, %v64_v53  ;;  %v76_v49 = vshrl.u32 %v2470_v1, %v64_v53 }
  0x30   :  { %v2523_v41 = vmul.u32.u64.low %v2508_v50, %v200_v37  ;;  %v2524_v42 = vmul.u32.u64.high %v2508_v50, %v200_v37, %v2523_v41  ;;  %v2527_v43 = vmul.u32.u64.low %v2508_v50, %v196_v36  ;;  %v2528_v44 = vmul.u32.u64.high %v2508_v50, %v196_v36, %v2527_v43 }
  0x31   :  { %v74_v45 = vor.u32 %v73_v40, %v72_v4  ;;  %v78_v54 = vshll.u32 %v2470_v1, %v63_v47  ;;  %v208_v55 = vmul.u32 %v2508_v50, %v192_v29  ;;  %v79_v56 = vshrl.u32 %v2471_v10, %v64_v53 }
  0x32   :  { %v97_v48 = vshll.u32 %v57_v51, 8  ;;  %v77_v57 = vor.u32 %v76_v49, %v75_v46  ;;  %vm82_vm9 = vcmp.lt.s32.totalorder %v2511_v52, 2  ;;  %vm83_vm10 = vcmp.lt.s32.totalorder %v2511_v52, 3 }
  0x33   :  { %vm84_vm11 = vcmp.lt.s32.totalorder %v2511_v52, 4  ;;  %vm210_vm12 = vc.u32 %v2524_v42, %v2527_v43  ;;  %v211_v58 = vadd.s32 1, %v2528_v44  ;;  %v80_v59 = vor.u32 %v79_v56, %v78_v54 }
  0x34   :  { %v89_v60 = vsel %vm81_vm8, %v68_v35, %v71_v39  ;;  %v85_v47 = vsel %vm81_vm8, %v65_v27, %v68_v35  ;;  %v86_v61 = vsel %vm84_vm11, %v74_v45, 2102212464  ;;  %v90_v50 = vsel %vm84_vm11, %v77_v57, 920167782 }
  0x35   :  { %v93_v53 = vsel %vm81_vm8, %v71_v39, %v74_v45  ;;  %v212_v62 = vsel %vm210_vm12, %v211_v58, %v2528_v44  ;;  %v87_v51 = vsel %vm83_vm10, %v71_v39, %v86_v61  ;;  %v91_v63 = vsel %vm83_vm10, %v74_v45, %v90_v50 }
  0x36   :  { %v94_v0 = vsel %vm84_vm11, %v80_v59, 1326507024  ;;  %v213_v1 = vadd.s32 %v212_v62, %v208_v55  ;;  %v92_v3 = vsel %vm82_vm9, %v89_v60, %v91_v63  ;;  %v88_v5 = vsel %vm82_vm9, %v85_v47, %v87_v51 }
  0x37   :  { %v95_v4 = vsel %vm83_vm10, %v77_v57, %v94_v0  ;;  %v2550_v7 = vmul.u32.u64.low %v97_v48, %v92_v3  ;;  %v2551_v8 = vmul.u32.u64.high %v97_v48, %v92_v3, %v2550_v7  ;;  %v104_v13 = vmul.u32 %v97_v48, %v88_v5 }
  0x38   :  { %v96_v6 = vsel %vm82_vm9, %v93_v53, %v95_v4  ;;  %v214_v9 = vadd.s32 536870912, %v213_v1  ;;  %v209_v27 = vadd.s32 %v2527_v43, %v2524_v42  ;;  %vm245_vm10 = vweird.f32 %v2497_v32 }
  0x39   :  { %v2553_v10 = vmul.u32.u64.low %v97_v48, %v96_v6  ;;  %v2554_v11 = vmul.u32.u64.high %v97_v48, %v96_v6, %v2553_v10  ;;  %v107_v14 = vadd.s32 1, %v2551_v8  ;;  %vm484_vm11 = vcmask 1043456  }
  0x3a   :  { %v215_v12 = vshrl.u32 %v214_v9, 30 }
  0x3b   :  { %vm106_vm13 = vc.u32 %v2554_v11, %v2550_v7  ;;  %v105_v55 = vadd.s32 %v2550_v7, %v2554_v11 }
  0x3c   :  { %v216_v15 = vshll.u32 %v215_v12, 30  ;;  %v108_v16 = vsel %vm106_vm13, %v107_v14, %v2551_v8  ;;  %v239_v42 = vsub.s32 4, %v215_v12 }
  0x3d   :  { %v109_v18 = vadd.s32 %v108_v16, %v104_v13 }
  0x3e   :  { %v217_v17 = vsub.s32 %v213_v1, %v216_v15  ;;  %v240_v50 = vsel %vm155_vm0, %v239_v42, %v215_v12 }
  0x3f   :  { %v110_v19 = vadd.s32 536870912, %v109_v18  ;;  %v242_v0 = vsel %vm154_vm1, 0, %v240_v50 }
  0x40   :  { %v219_v52 = vsub.s32 0, %v217_v17  ;;  %v246_v6 = vadd.s32 3, %v242_v0  ;;  %v453_v10 = vand.u32 3, %v242_v0  ;;  %v1983_v0 = vld [vmem:[%s2974_s0 + $0x1e8] sm:$0xff] }
  0x41   :  { %v111_v21 = vshrl.u32 %v110_v19, 30  ;;  %v1802_v19 = vld [vmem:[%s2974_s0 + $0x170] sm:$0xff] }
  0x42   :  { %v2224_v20 = vmin.u32 %v219_v52, %v217_v17  ;;  %v247_v9 = vand.u32 3, %v246_v6  ;;  %vm455_vm5 = vcmp.eq.s32.totalorder %v453_v10, 0  ;;  %vm458_vm6 = vcmp.eq.s32.totalorder %v453_v10, 2 }
  0x43   :  { %v112_v23 = vshll.u32 %v111_v21, 30  ;;  %v135_v5 = vsub.s32 4, %v111_v21  ;;  %vm454_vm9 = vcmp.lt.s32.totalorder %v453_v10, 2  ;;  %v2472_v52 = vmov 0  }
  0x44   :  { %v221_v22 = vclz %v2224_v20  ;;  %vm252_vm4 = vcmp.eq.s32.totalorder %v247_v9, 2  ;;  %vm249_vm7 = vcmp.eq.s32.totalorder %v247_v9, 0  ;;  %vm248_vm8 = vcmp.lt.s32.totalorder %v247_v9, 2  ;;  %2431 = vset.pattern.permute.xlu0 %v2472_v52  ;;  %2432 = vset.pattern.permute.xlu1 %v2472_v52  ;;  %v938_v9 = vld [vmem:[%s2974_s0 + $0x88] sm:$0xff] }
  0x45   :  { %v113_v25 = vsub.s32 %v109_v18, %v112_v23  ;;  %v136_v8 = vsel %vm51_vm2, %v135_v5, %v111_v21  ;;  %1806 = vperm.xlu0 %2431, %v1800_v38   ;;  %1816 = vperm.xlu1 %2432, %v1802_v19   ;;  %v468_v5 = vld [vmem:[%s2974_s0 + $0x28] sm:$0xff]  ;;  %v1066_v19 = vld [vmem:[%s2974_s0 + $0xa0] sm:$0xff] }
  0x46   :  { %v2225_v24 = vadd.s32 4294967294, %v221_v22  ;;  %v138_v13 = vsel %vm50_vm3, 0, %v136_v8  ;;  %v1984_v8 = vld [vmem:[%s2974_s0 + $0x1f0] sm:$0xff] }
  0x47   :  { %v115_v31 = vsub.s32 0, %v113_v25 }
  0x48   :  { %vm2226_vm14 = vcmp.lt.s32.totalorder %v2225_v24, 0 }
  0x49   :  { %v224_v29 = vsel %vm2226_vm14, 0, %v2225_v24  ;;  %v2220_v37 = vmin.u32 %v115_v31, %v113_v25  ;;  %v1801_v24 = vld [vmem:[%s2974_s0 + $0x168] sm:$0xff]  ;;  %v1803_v31 = vld [vmem:[%s2974_s0 + $0x178] sm:$0xff] }
  0x4a   :  { %v225_v34 = vsub.s32 32, %v224_v29  ;;  %v226_v35 = vshll.u32 %v217_v17, %v224_v29  ;;  %v229_v36 = vsub.s32 4294967266, %v224_v29  ;;  %v142_v17 = vadd.s32 3, %v138_v13  ;;  %1811 = vperm.xlu0 %2431, %v1801_v24   ;;  %1821 = vperm.xlu1 %2432, %v1803_v31   ;;  %v465_v24 = vld [vmem:[%s2974_s0 + $0x10] sm:$0xff] }
  0x4b   :  { %v117_v41 = vclz %v2220_v37 }
  0x4c   :  { %v227_v39 = vshrl.u32 %v209_v27, %v225_v34  ;;  %v230_v40 = vadd.s32 127, %v229_v36  ;;  %v143_v29 = vand.u32 3, %v142_v17  ;;  %v463_v17 = vld [vmem:[%s2974_s0] sm:$0xff] }
  0x4d   :  { %v2221_v46 = vadd.s32 4294967294, %v117_v41 }
  0x4e   :  { %v228_v44 = vor.u32 %v227_v39, %v226_v35  ;;  %v231_v45 = vshll.u32 %v230_v40, 23  ;;  %v1844_v40 = vld [vmem:[%s2974_s0 + $0x1a0] sm:$0xff]  ;;  %vm148_vm12 = vcmp.eq.s32.totalorder %v143_v29, 2  ;;  %vm145_vm14 = vcmp.eq.s32.totalorder %v143_v29, 0 }
  0x4f   :  { %vm2222_vm15 = vcmp.lt.s32.totalorder %v2221_v46, 0  ;;  %1850 = vperm.xlu0 %2431, %v1844_v40  }
  0x50   :  { %v232_v49 = vor.u32 4788187, %v231_v45  ;;  %v235_v54 = vcvt.s32.f32 %v228_v44  ;;  %v120_v43 = vsel %vm2222_vm15, 0, %v2221_v46  ;;  %v1845_v45 = vld [vmem:[%s2974_s0 + $0x1a8] sm:$0xff] }
  0x51   :  { %v121_v48 = vsub.s32 32, %v120_v43  ;;  %v122_v57 = vshll.u32 %v113_v25, %v120_v43  ;;  %v125_v58 = vsub.s32 4294967266, %v120_v43  ;;  %v1846_v43 = vld [vmem:[%s2974_s0 + $0x1b0] sm:$0xff]  ;;  %1855 = vperm.xlu1 %2432, %v1845_v45  }
  0x52   :  { %v233_v56 = vand.u32 2147483647, %v232_v49  ;;  %v1187_v45 = vld [vmem:[%s2974_s0 + $0xd0] sm:$0xff] }
  0x53   :  { %v123_v60 = vshrl.u32 %v105_v55, %v121_v48  ;;  %v126_v47 = vadd.s32 127, %v125_v58  ;;  %v1847_v58 = vld [vmem:[%s2974_s0 + $0x1b8] sm:$0xff]  ;;  %1860 = vperm.xlu0 %2431, %v1846_v43   ;;  %v1314_v43 = vld [vmem:[%s2974_s0 + $0xe0] sm:$0xff] }
  0x54   :  { %v236_v59 = vmul.f32 %v235_v54, %v233_v56 }
  0x55   :  { %v124_v53 = vor.u32 %v123_v60, %v122_v57  ;;  %v127_v62 = vshll.u32 %v126_v47, 23  ;;  %1865 = vperm.xlu1 %2432, %v1847_v58  }
  0x56   :  { %v237_v61 = vxor.u32 2147483648, %v236_v59 }
  0x57   :  { %v128_v1 = vor.u32 4788187, %v127_v62  ;;  %v131_v3 = vcvt.s32.f32 %v124_v53 }
  0x58   :  { %v238_v51 = vsel %vm155_vm0, %v237_v61, %v236_v59  ;;  %vm144_vm0 = vcmp.lt.s32.totalorder %v143_v29, 2  ;;  %v1069_v29 = vld [vmem:[%s2974_s0 + $0xb8] sm:$0xff] }
  0x59   :  { %v241_v63 = vsel %vm154_vm1, %v2497_v32, %v238_v51  ;;  %v129_v4 = vand.u32 2147483647, %v128_v1  ;;  %v350_v32 = vand.u32 3, %v138_v13  ;;  %1993 = vperm.xlu1 %2432, %v1983_v0   ;;  %v2116_v13 = vld [vmem:[%s2974_s0 + $0x208] sm:$0x7] }
  0x5a   :  { %2433 = vcosq.f32 %v241_v63 }
  0x5b   :  { %2435 = vsinq.f32 %v241_v63  ;;  %v132_v7 = vmul.f32 %v131_v3, %v129_v4  ;;  %vm355_vm13 = vcmp.eq.s32.totalorder %v350_v32, 2  ;;  %vm352_vm15 = vcmp.eq.s32.totalorder %v350_v32, 0  ;;  %v1982_v63 = vld [vmem:[%s2974_s0 + $0x1e0] sm:$0xff] }
  0x5c   :  { %vm351_vm1 = vcmp.lt.s32.totalorder %v350_v32, 2  ;;  %v937_v4 = vld [vmem:[%s2974_s0 + $0x80] sm:$0xff]  ;;  %1988 = vperm.xlu0 %2431, %v1982_v63  }
  0x5d   :  { %v133_v33 = vxor.u32 2147483648, %v132_v7  ;;  %v689_v32 = vld [vmem:[%s2974_s0 + $0x40] sm:$0xff] }
  0x5f   :  { %v134_v11 = vsel %vm51_vm2, %v133_v33, %v132_v7  ;;  %vm141_vm2 = vweird.f32 %v2493_v30 }
  0x60   :  { %v137_v12 = vsel %vm50_vm3, %v2493_v30, %v134_v11  ;;  %vm471_vm3 = vcmask 31744   ;;  %v467_v30 = vld [vmem:[%s2974_s0 + $0x20] sm:$0xff]  ;;  %v469_v11 = vld [vmem:[%s2974_s0 + $0x30] sm:$0xff]  ;;  %1998 = vperm.xlu0 %2431, %v1984_v8  }
  0x61   :  { %2437 = vcosq.f32 %v137_v12  ;;  %v1564_v8 = vld [vmem:[%s2974_s0 + $0x130] sm:$0xff] }
  0x62   :  { %2439 = vsinq.f32 %v137_v12 }
  0x64   :  { %v2434_v14 = vpop.eup %2433  ;;  %2119 = vperm.xlu0 %2431, %v2116_v13  }
  0x65   :  { %v2436_v15 = vpop.eup %2435  ;;  %v253_v16 = vxor.u32 2147483648, %v2434_v14 }
  0x66   :  { %v250_v18 = vxor.u32 2147483648, %v2436_v15 }
  0x67   :  { %v254_v20 = vsel %vm252_vm4, %v253_v16, %v2436_v15  ;;  %v460_v21 = vsel %vm458_vm6, %v253_v16, %v2436_v15  ;;  %vm593_vm4 = vcmask 1041408   ;;  %v470_v15 = vld [vmem:[%s2974_s0 + $0x38] sm:$0xff]  ;;  %vm1868_vm6 = vcmask 261120  }
  0x68   :  { %v251_v22 = vsel %vm249_vm7, %v2434_v14, %v250_v18  ;;  %v457_v23 = vsel %vm455_vm5, %v2434_v14, %v250_v18  ;;  %v939_v14 = vld [vmem:[%s2974_s0 + $0x90] sm:$0xff]  ;;  %v940_v16 = vld [vmem:[%s2974_s0 + $0x98] sm:$0xff]  ;;  %vm580_vm5 = vcmask 15360  }
  0x69   :  { %v255_v25 = vsel %vm248_vm8, %v251_v22, %v254_v20  ;;  %v461_v27 = vsel %vm454_vm9, %v457_v23, %v460_v21  ;;  %v464_v20 = vld [vmem:[%s2974_s0 + $0x8] sm:$0xff] }
  0x6a   :  { %v256_v34 = vsel %vm245_vm10, nan, %v255_v25  ;;  %v462_v35 = vsel %vm245_vm10, nan, %v461_v27  ;;  %v1067_v23 = vld [vmem:[%s2974_s0 + $0xa8] sm:$0xff]  ;;  %v1068_v25 = vld [vmem:[%s2974_s0 + $0xb0] sm:$0xff]  ;;  %v466_v27 = vld [vmem:[%s2974_s0 + $0x18] sm:$0xff] }
  0x6b   :  { %2235 = vmatprep.subr.msk.mxu1 %vm484_vm11, %v256_v34  ;;  %v809_v36 = vmul.f32 2.0, %v256_v34  ;;  %v813_v37 = vsub.f32 %v462_v35, %v256_v34  ;;  %v815_v39 = vadd.f32 %v462_v35, %v256_v34  ;;  %v2438_v41 = vpop.eup %2437 }
  0x6c   :  { %v2440_v46 = vpop.eup %2439  ;;  %v149_v54 = vxor.u32 2147483648, %v2438_v41 }
  0x6d   :  { %v2591_v44 = vmul.f32 %v815_v39, %v813_v37  ;;  %v2596_v49 = vmul.f32 %v809_v36, %v462_v35  ;;  %v146_v55 = vxor.u32 2147483648, %v2440_v46  ;;  %v1185_v36 = vld [vmem:[%s2974_s0 + $0xc0] sm:$0xff]  ;;  %v690_v37 = vld [vmem:[%s2974_s0 + $0x48] sm:$0xff] }
  0x6e   :  { %v150_v56 = vsel %vm148_vm12, %v149_v54, %v2440_v46  ;;  %v357_v42 = vsel %vm355_vm13, %v149_v54, %v2440_v46  ;;  %v692_v46 = vld [vmem:[%s2974_s0 + $0x58] sm:$0xff]  ;;  %v818_v54 = vld [vmem:[%s2974_s0 + $0x60] sm:$0xff] }
  0x6f   :  { %2259 = vmatprep.subr.msk.mxu0 %vm484_vm11, %v2591_v44  ;;  %v147_v48 = vsel %vm145_vm14, %v2438_v41, %v146_v55  ;;  %v354_v57 = vsel %vm352_vm15, %v2438_v41, %v146_v55  ;;  %v1057_v47 = vmul.f32 2.0, %v2596_v49  ;;  %v1061_v6 = vsub.f32 %v2591_v44, %v2596_v49  ;;  %v1186_v41 = vld [vmem:[%s2974_s0 + $0xc8] sm:$0xff] }
  0x70   :  { %v151_v59 = vsel %vm144_vm0, %v147_v48, %v150_v56  ;;  %v358_v60 = vsel %vm351_vm1, %v354_v57, %v357_v42  ;;  %v1063_v7 = vadd.f32 %v2591_v44, %v2596_v49  ;;  %v819_v48 = vld [vmem:[%s2974_s0 + $0x68] sm:$0xff] }
  0x71   :  { %v152_v61 = vsel %vm141_vm2, nan, %v151_v59  ;;  %v2611_v50 = vsel %vm141_vm2, nan, %v358_v60  ;;  %v1315_v59 = vld [vmem:[%s2974_s0 + $0xe8] sm:$0xff]  ;;  %v820_v60 = vld [vmem:[%s2974_s0 + $0x70] sm:$0xff] }
  0x72   :  { %2236 = vmatpush1.msk.msra.mxu1 %vm484_vm11, %v152_v61  ;;  %v808_v53 = vmul.f32 2.0, %v152_v61  ;;  %v812_v62 = vsub.f32 %v2611_v50, %v152_v61  ;;  %v814_v51 = vadd.f32 %v2611_v50, %v152_v61  ;;  %v2667_v12 = vmul.f32 %v1063_v7, %v1061_v6  ;;  %v1317_v61 = vld [vmem:[%s2974_s0 + $0xf8] sm:$0xff]  ;;  %v1562_v6 = vld [vmem:[%s2974_s0 + $0x120] sm:$0xff] }
  0x73   :  { %2237 = vmatmul.mubr.msk.f32.vlgmr.msra.gmra.mrb[0].mxu1 %vm471_vm3, %v467_v30  ;;  %2241 = vmatprep.subr.msk.mxu1 %vm593_vm4, %v2489_v28  ;;  %v2636_v28 = vmul.f32 %v1057_v47, %v2591_v44  ;;  %v691_v44 = vld [vmem:[%s2974_s0 + $0x50] sm:$0xff]  ;;  %v821_v47 = vld [vmem:[%s2974_s0 + $0x78] sm:$0xff] }
  0x74   :  { %v2626_v1 = vmul.f32 %v808_v53, %v2611_v50  ;;  %v816_v3 = vmul.f32 %v814_v51, %v812_v62  ;;  %561 = vmatprep.mubr.f32.mxu1 %v2465_v2  ;;  %2242 = vmatpush1.msk.msra.mxu1 %vm593_vm4, %v2486_v26  ;;  %v1985_v26 = vld [vmem:[%s2974_s0 + $0x1f8] sm:$0xff]  ;;  %v1316_v30 = vld [vmem:[%s2974_s0 + $0xf0] sm:$0xff]  ;;  %v1433_v51 = vld [vmem:[%s2974_s0 + $0x100] sm:$0xff] }
  0x75   :  { %2247 = vmatprep.subr.msk.mxu1 %vm484_vm11, %v462_v35  ;;  %2003 = vperm.xlu1 %2432, %v1985_v26   ;;  %v1305_v52 = vmul.f32 2.0, %v2636_v28  ;;  %v1309_v34 = vsub.f32 %v2667_v12, %v2636_v28  ;;  %v1311_v35 = vadd.f32 %v2667_v12, %v2636_v28  ;;  %v1565_v26 = vld [vmem:[%s2974_s0 + $0x138] sm:$0xff] }
  0x76   :  { %2260 = vmatpush1.msk.msra.mxu0 %vm484_vm11, %v816_v3  ;;  %v1056_v33 = vmul.f32 2.0, %v2626_v1  ;;  %v1060_v38 = vsub.f32 %v816_v3, %v2626_v1  ;;  %v1062_v18 = vadd.f32 %v816_v3, %v2626_v1 }
  0x77   :  { %2261 = vmatmul.mubr.msk.f32.vlgmr.msra.gmra.mrb[0].mxu0 %vm471_vm3, %v937_v4  ;;  %2238 = vmatmul.mubr.msk.f32.gmra.mrb[2].mxu1 %vm471_vm3, %v468_v5  ;;  %v2714_v22 = vmul.f32 %v1305_v52, %v2667_v12  ;;  %v1313_v40 = vmul.f32 %v1311_v35, %v1309_v34  ;;  %v1436_v4 = vld [vmem:[%s2974_s0 + $0x118] sm:$0xff] }
  0x78   :  { %1029 = vmatprep.mubr.f32.mxu0 %v2465_v2  ;;  %2265 = vmatprep.subr.msk.mxu0 %vm484_vm11, %v2636_v28  ;;  %v2661_v10 = vmul.f32 %v1056_v33, %v816_v3  ;;  %v2709_v21 = vmul.f32 %v1062_v18, %v1060_v38  ;;  %v1435_v3 = vld [vmem:[%s2974_s0 + $0x110] sm:$0xff]  ;;  %v1563_v33 = vld [vmem:[%s2974_s0 + $0x128] sm:$0xff] }
  0x79   :  { %567 = vmatprep.mubr.f32.mxu1 %v2465_v2  ;;  %v1553_v42 = vmul.f32 2.0, %v2714_v22  ;;  %v1557_v53 = vsub.f32 %v1313_v40, %v2714_v22  ;;  %v1559_v62 = vadd.f32 %v1313_v40, %v2714_v22 }
  0x7a   :  { %2266 = vmatpush1.msk.msra.mxu0 %vm484_vm11, %v2661_v10  ;;  %v1304_v31 = vmul.f32 2.0, %v2661_v10  ;;  %v1308_v55 = vsub.f32 %v2709_v21, %v2661_v10  ;;  %v1310_v56 = vadd.f32 %v2709_v21, %v2661_v10  ;;  %v1682_v10 = vld [vmem:[%s2974_s0 + $0x148] sm:$0xff] }
  0x7b   :  { %2262 = vmatmul.mubr.msk.f32.gmra.mrb[2].mxu0 %vm471_vm3, %v938_v9  ;;  %2239 = vmatmul.mubr.msk.f32.gmra.mrb[4].mxu1 %vm471_vm3, %v469_v11  ;;  %v1555_v58 = vmul.f32 %v1553_v42, %v1313_v40  ;;  %v1561_v0 = vmul.f32 %v1559_v62, %v1557_v53  ;;  %v1681_v9 = vld [vmem:[%s2974_s0 + $0x140] sm:$0xff]  ;;  %v1683_v11 = vld [vmem:[%s2974_s0 + $0x150] sm:$0xff] }
  0x7c   :  { %1035 = vmatprep.mubr.f32.mxu0 %v2465_v2  ;;  %573 = vmatprep.mubr.f32.mxu1 %v2465_v2  ;;  %v2768_v39 = vmul.f32 %v1304_v31, %v2709_v21  ;;  %v1312_v57 = vmul.f32 %v1310_v56, %v1308_v55 }
  0x7d   :  { %2271 = vmatprep.subr.msk.mxu0 %vm484_vm11, %v2667_v12  ;;  %v1684_v12 = vld [vmem:[%s2974_s0 + $0x158] sm:$0xff] }
  0x7e   :  { %v1556_v5 = vsub.f32 %v1312_v57, %v2768_v39  ;;  %v1558_v28 = vadd.f32 %v1312_v57, %v2768_v39 }
  0x7f   :  { %2263 = vmatmul.mubr.msk.f32.gmra.mrb[4].mxu0 %vm471_vm3, %v939_v14  ;;  %2240 = vmatmul.mubr.msk.f32.gmra.mrb[6].mxu1 %vm471_vm3, %v470_v15 }
  0x80   :  { %1041 = vmatprep.mubr.f32.mxu0 %v2465_v2  ;;  %664 = vmatprep.mubr.f32.mxu1 %v2465_v2  ;;  %v1560_v7 = vmul.f32 %v1558_v28, %v1556_v5 }
  0x83   :  { %2264 = vmatmul.mubr.msk.f32.gmra.mrb[6].mxu0 %vm471_vm3, %v940_v16  ;;  %2243 = vmatmul.mubr.msk.f32.vlgmr.msra.gmra.mrb[0].mxu1 %vm580_vm5, %v463_v17 }
  0x84   :  { %1152 = vmatprep.mubr.f32.mxu0 %v2465_v2  ;;  %670 = vmatprep.mubr.f32.mxu1 %v2465_v2 }
  0x85   :  { %2248 = vmatpush1.msk.msra.mxu1 %vm484_vm11, %v2611_v50  ;;  %v1552_v50 = vmul.f32 2.0, %v2768_v39 }
  0x86   :  { %2253 = vmatprep.subr.msk.mxu1 %vm484_vm11, %v2596_v49  ;;  %v1188_v49 = vld [vmem:[%s2974_s0 + $0xd8] sm:$0xff] }
  0x87   :  { %2267 = vmatmul.mubr.msk.f32.vlgmr.msra.gmra.mrb[0].mxu0 %vm471_vm3, %v1066_v19  ;;  %2244 = vmatmul.mubr.msk.f32.gmra.mrb[2].mxu1 %vm580_vm5, %v464_v20  ;;  %v1554_v63 = vmul.f32 %v1552_v50, %v1312_v57 }
  0x88   :  { %1158 = vmatprep.mubr.f32.mxu0 %v2465_v2  ;;  %2272 = vmatpush1.msk.msra.mxu0 %vm484_vm11, %v2709_v21 }
  0x89   :  { %676 = vmatprep.mubr.f32.mxu1 %v2465_v2  ;;  %2277 = vmatprep.subr.msk.mxu0 %vm484_vm11, %v2714_v22 }
  0x8b   :  { %2268 = vmatmul.mubr.msk.f32.gmra.mrb[2].mxu0 %vm471_vm3, %v1067_v23  ;;  %2245 = vmatmul.mubr.msk.f32.gmra.mrb[4].mxu1 %vm580_vm5, %v465_v24 }
  0x8c   :  { %1164 = vmatprep.mubr.f32.mxu0 %v2465_v2  ;;  %682 = vmatprep.mubr.f32.mxu1 %v2465_v2 }
  0x8f   :  { %2269 = vmatmul.mubr.msk.f32.gmra.mrb[4].mxu0 %vm471_vm3, %v1068_v25  ;;  %2246 = vmatmul.mubr.msk.f32.gmra.mrb[6].mxu1 %vm580_vm5, %v466_v27 }
  0x90   :  { %1170 = vmatprep.mubr.f32.mxu0 %v2465_v2  ;;  %775 = vmatprep.mubr.f32.mxu1 %v2465_v2 }
  0x93   :  { %2270 = vmatmul.mubr.msk.f32.gmra.mrb[6].mxu0 %vm471_vm3, %v1069_v29  ;;  %2249 = vmatmul.mubr.msk.f32.vlgmr.msra.gmra.mrb[0].mxu1 %vm471_vm3, %v689_v32 }
  0x94   :  { %1271 = vmatprep.mubr.f32.mxu0 %v2465_v2  ;;  %781 = vmatprep.mubr.f32.mxu1 %v2465_v2 }
  0x95   :  { %2254 = vmatpush1.msk.msra.mxu1 %vm484_vm11, %v2626_v1  ;;  %v1434_v1 = vld [vmem:[%s2974_s0 + $0x108] sm:$0xff] }
  0x97   :  { %2273 = vmatmul.mubr.msk.f32.vlgmr.msra.gmra.mrb[0].mxu0 %vm471_vm3, %v1185_v36  ;;  %2250 = vmatmul.mubr.msk.f32.gmra.mrb[2].mxu1 %vm471_vm3, %v690_v37 }
  0x98   :  { %1277 = vmatprep.mubr.f32.mxu0 %v2465_v2  ;;  %2278 = vmatpush1.msk.msra.mxu0 %vm484_vm11, %v2768_v39 }
  0x99   :  { %787 = vmatprep.mubr.f32.mxu1 %v2465_v2  ;;  %2283 = vmatprep.subr.msk.mxu0 %vm484_vm11, %v1313_v40 }
  0x9b   :  { %2274 = vmatmul.mubr.msk.f32.gmra.mrb[2].mxu0 %vm471_vm3, %v1186_v41  ;;  %2251 = vmatmul.mubr.msk.f32.gmra.mrb[4].mxu1 %vm471_vm3, %v691_v44 }
  0x9c   :  { %1283 = vmatprep.mubr.f32.mxu0 %v2465_v2  ;;  %793 = vmatprep.mubr.f32.mxu1 %v2465_v2 }
  0x9f   :  { %2275 = vmatmul.mubr.msk.f32.gmra.mrb[4].mxu0 %vm471_vm3, %v1187_v45  ;;  %2252 = vmatmul.mubr.msk.f32.gmra.mrb[6].mxu1 %vm471_vm3, %v692_v46 }
  0xa0   :  { %1289 = vmatprep.mubr.f32.mxu0 %v2465_v2  ;;  %904 = vmatprep.mubr.f32.mxu1 %v2465_v2 }
  0xa3   :  { %2276 = vmatmul.mubr.msk.f32.gmra.mrb[6].mxu0 %vm471_vm3, %v1188_v49  ;;  %2255 = vmatmul.mubr.msk.f32.vlgmr.msra.gmra.mrb[0].mxu1 %vm471_vm3, %v818_v54 }
  0xa4   :  { %1400 = vmatprep.mubr.f32.mxu0 %v2465_v2  ;;  %910 = vmatprep.mubr.f32.mxu1 %v2465_v2 }
  0xa7   :  { %2279 = vmatmul.mubr.msk.f32.vlgmr.msra.gmra.mrb[0].mxu0 %vm471_vm3, %v1314_v43  ;;  %2256 = vmatmul.mubr.msk.f32.gmra.mrb[2].mxu1 %vm471_vm3, %v819_v48 }
  0xa8   :  { %1406 = vmatprep.mubr.f32.mxu0 %v2465_v2  ;;  %2284 = vmatpush1.msk.msra.mxu0 %vm484_vm11, %v1312_v57 }
  0xa9   :  { %916 = vmatprep.mubr.f32.mxu1 %v2465_v2  ;;  %2289 = vmatprep.subr.msk.mxu0 %vm484_vm11, %v1555_v58 }
  0xab   :  { %2280 = vmatmul.mubr.msk.f32.gmra.mrb[2].mxu0 %vm471_vm3, %v1315_v59  ;;  %2257 = vmatmul.mubr.msk.f32.gmra.mrb[4].mxu1 %vm471_vm3, %v820_v60 }
  0xac   :  { %1412 = vmatprep.mubr.f32.mxu0 %v2465_v2  ;;  %922 = vmatprep.mubr.f32.mxu1 %v2465_v2 }
  0xaf   :  { %2281 = vmatmul.mubr.msk.f32.gmra.mrb[4].mxu0 %vm471_vm3, %v1316_v30  ;;  %2258 = vmatmul.mubr.msk.f32.gmra.mrb[6].mxu1 %vm471_vm3, %v821_v47 }
  0xb0   :  { %1418 = vmatprep.mubr.f32.mxu0 %v2465_v2  ;;  %1945 = vmatprep.mubr.f32.mxu1 %v2465_v2 }
  0xb3   :  { %2282 = vmatmul.mubr.msk.f32.gmra.mrb[6].mxu0 %vm471_vm3, %v1317_v61 }
  0xb4   :  { %1519 = vmatprep.mubr.f32.mxu0 %v2465_v2 }
  0xb7   :  { %2285 = vmatmul.mubr.msk.f32.vlgmr.msra.gmra.mrb[0].mxu0 %vm471_vm3, %v1433_v51 }
  0xb8   :  { %1525 = vmatprep.mubr.f32.mxu0 %v2465_v2  ;;  %2290 = vmatpush1.msk.msra.mxu0 %vm484_vm11, %v1554_v63 }
  0xb9   :  { %2295 = vmatprep.subr.msk.mxu0 %vm484_vm11, %v1561_v0  ;;  %v1840_v0 = vld [vmem:[%s2974_s0 + $0x180] sm:$0xff] }
  0xbb   :  { %2286 = vmatmul.mubr.msk.f32.gmra.mrb[2].mxu0 %vm471_vm3, %v1434_v1  ;;  %v1841_v1 = vld [vmem:[%s2974_s0 + $0x188] sm:$0xff] }
  0xbc   :  { %1531 = vmatprep.mubr.f32.mxu0 %v2465_v2 }
  0xbf   :  { %2287 = vmatmul.mubr.msk.f32.gmra.mrb[4].mxu0 %vm471_vm3, %v1435_v3  ;;  %v1842_v3 = vld [vmem:[%s2974_s0 + $0x190] sm:$0xff] }
  0xc0   :  { %1537 = vmatprep.mubr.f32.mxu0 %v2465_v2 }
  0xc3   :  { %2288 = vmatmul.mubr.msk.f32.gmra.mrb[6].mxu0 %vm471_vm3, %v1436_v4  ;;  %v1843_v4 = vld [vmem:[%s2974_s0 + $0x198] sm:$0xff] }
  0xc4   :  { %1648 = vmatprep.mubr.f32.mxu0 %v2465_v2  ;;  %v1807_v19 = vpop.permute.xlu0 %1806  ;;  %v1817_v36 = vpop.permute.xlu1 %1816 }
  0xc7   :  { %2291 = vmatmul.mubr.msk.f32.vlgmr.msra.gmra.mrb[0].mxu0 %vm471_vm3, %v1562_v6 }
  0xc8   :  { %1654 = vmatprep.mubr.f32.mxu0 %v2465_v2  ;;  %2296 = vmatpush1.msk.msra.mxu0 %vm484_vm11, %v1560_v7 }
  0xc9   :  { %v1812_v32 = vpop.permute.xlu0 %1811  ;;  %v1822_v58 = vpop.permute.xlu1 %1821 }
  0xcb   :  { %2292 = vmatmul.mubr.msk.f32.gmra.mrb[2].mxu0 %vm471_vm3, %v1563_v33 }
  0xcc   :  { %1660 = vmatprep.mubr.f32.mxu0 %v2465_v2 }
  0xce   :  { %v1851_v6 = vpop.permute.xlu0 %1850 }
  0xcf   :  { %2293 = vmatmul.mubr.msk.f32.gmra.mrb[4].mxu0 %vm471_vm3, %v1564_v8 }
  0xd0   :  { %1666 = vmatprep.mubr.f32.mxu0 %v2465_v2  ;;  %v1856_v33 = vpop.permute.xlu1 %1855 }
  0xd3   :  { %2294 = vmatmul.mubr.msk.f32.gmra.mrb[6].mxu0 %vm471_vm3, %v1565_v26 }
  0xd4   :  { %1767 = vmatprep.mubr.f32.mxu0 %v2465_v2 }
  0xd7   :  { %2297 = vmatmul.mubr.msk.f32.vlgmr.msra.gmra.mrb[0].mxu0 %vm471_vm3, %v1681_v9 }
  0xd8   :  { %1773 = vmatprep.mubr.f32.mxu0 %v2465_v2 }
  0xdb   :  { %2298 = vmatmul.mubr.msk.f32.gmra.mrb[2].mxu0 %vm471_vm3, %v1682_v10 }
  0xdc   :  { %1779 = vmatprep.mubr.f32.mxu0 %v2465_v2 }
  0xdf   :  { %2299 = vmatmul.mubr.msk.f32.gmra.mrb[4].mxu0 %vm471_vm3, %v1683_v11 }
  0xe0   :  { %1785 = vmatprep.mubr.f32.mxu0 %v2465_v2 }
  0xe3   :  { %2300 = vmatmul.mubr.msk.f32.gmra.mrb[6].mxu0 %vm471_vm3, %v1684_v12 }
 0x176   :  { %v906_v13 = vpop.f32.mrb[0].mxu1 }
 0x177   :  { %v908_v14 = vpop.f32.mrb[1].mxu1 }
 0x17a   :  { %v912_v15 = vpop.f32.mrb[2].mxu1 }
 0x17b   :  { %v914_v16 = vpop.f32.mrb[3].mxu1 }
 0x17e   :  { %v918_v17 = vpop.f32.mrb[4].mxu1 }
 0x17f   :  { %v920_v38 = vpop.f32.mrb[5].mxu1 }
 0x182   :  { %v924_v18 = vpop.f32.mrb[6].mxu1 }
 0x183   :  { %v926_v52 = vpop.f32.mrb[7].mxu1 }
 0x1aa   :  { %v1769_v20 = vpop.f32.mrb[0].mxu0 }
 0x1ab   :  { %v2334_v21 = vadd.f32 %v1769_v20, %v906_v13  ;;  %v1771_v22 = vpop.f32.mrb[1].mxu0  ;;  %v1866_v20 = vpop.permute.xlu1 %1865 }
 0x1ac   :  { %v2335_v23 = vadd.f32 %v1771_v22, %v908_v14 }
 0x1ad   :  { %v1824_v25 = vadd.f32 %v2334_v21, %v1807_v19 }
 0x1ae   :  { %v1775_v24 = vpop.f32.mrb[2].mxu0  ;;  %v1825_v31 = vadd.f32 %v2335_v23, %v1807_v19 }
 0x1af   :  { %v2336_v27 = vadd.f32 %v1775_v24, %v912_v15  ;;  %v1777_v29 = vpop.f32.mrb[3].mxu0  ;;  %v1832_v40 = vmax.f32 %v1824_v25, 0.0 }
 0x1b0   :  { %v2337_v34 = vadd.f32 %v1777_v29, %v914_v16  ;;  %v1833_v46 = vmax.f32 %v1825_v31, 0.0 }
 0x1b1   :  { %v1826_v35 = vadd.f32 %v2336_v27, %v1812_v32 }
 0x1b2   :  { %v1827_v37 = vadd.f32 %v2337_v34, %v1812_v32  ;;  %v1781_v39 = vpop.f32.mrb[4].mxu0 }
 0x1b3   :  { %v1834_v41 = vmax.f32 %v1826_v35, 0.0  ;;  %v2338_v44 = vadd.f32 %v1781_v39, %v918_v17  ;;  %v1783_v45 = vpop.f32.mrb[5].mxu0  ;;  %v1980_v39 = vld [vmem:[%s2974_s0 + $0x1d0] sm:$0xff] }
 0x1b4   :  { %v1835_v49 = vmax.f32 %v1827_v37, 0.0  ;;  %v2339_v54 = vadd.f32 %v1783_v45, %v920_v38  ;;  %v1979_v37 = vld [vmem:[%s2974_s0 + $0x1c8] sm:$0xff] }
 0x1b5   :  { %v2312_v55 = vpack.c.bf16 %v1834_v41, %v1832_v40  ;;  %v1828_v43 = vadd.f32 %v2338_v44, %v1817_v36  ;;  %v1981_v40 = vld [vmem:[%s2974_s0 + $0x1d8] sm:$0xff] }
 0x1b6   :  { %v1787_v56 = vpop.f32.mrb[6].mxu0  ;;  %v2310_v42 = vpack.c.bf16 %v1835_v49, %v1833_v46  ;;  %v1829_v59 = vadd.f32 %v2339_v54, %v1817_v36  ;;  %v1978_v36 = vld [vmem:[%s2974_s0 + $0x1c0] sm:$0xff]  ;;  %v1994_v49 = vpop.permute.xlu1 %1993 }
 0x1b7   :  { %v2340_v48 = vadd.f32 %v1787_v56, %v924_v18  ;;  %v1789_v57 = vpop.f32.mrb[7].mxu0  ;;  %v1836_v61 = vmax.f32 %v1828_v43, 0.0  ;;  %v1861_v18 = vpop.permute.xlu0 %1860 }
 0x1b8   :  { %v2341_v60 = vadd.f32 %v1789_v57, %v926_v52  ;;  %2311 = vmatprep.subr.bf16.mxu1 %v2310_v42  ;;  %v1837_v53 = vmax.f32 %v1829_v59, 0.0 }
 0x1b9   :  { %v1830_v30 = vadd.f32 %v2340_v48, %v1822_v58  ;;  %2313 = vmatpush1.bf16.msra.mxu1 %v2312_v55 }
 0x1ba   :  { %v1831_v47 = vadd.f32 %v2341_v60, %v1822_v58 }
 0x1bb   :  { %v1838_v50 = vmax.f32 %v1830_v30, 0.0  ;;  %v1989_v45 = vpop.permute.xlu0 %1988 }
 0x1bc   :  { %v1839_v62 = vmax.f32 %v1831_v47, 0.0 }
 0x1bd   :  { %v2316_v51 = vpack.c.bf16 %v1838_v50, %v1836_v61 }
 0x1be   :  { %v2314_v63 = vpack.c.bf16 %v1839_v62, %v1837_v53  ;;  %v2004_v53 = vpop.permute.xlu1 %2003 }
 0x1bf   :  { %v1999_v61 = vpop.permute.xlu0 %1998 }
 0x1c0   :  { %2315 = vmatprep.subr.bf16.mxu1 %v2314_v63 }
 0x1c1   :  { %2317 = vmatpush1.bf16.msra.mxu1 %v2316_v51 }
 0x1c4   :  { %2301 = vmatmul.mubr.msk.f32.vlgmr.msra.gmra.mrb[8].mxu1 %vm1868_vm6, %v1840_v0 }
 0x1c5   :  { %1951 = vmatprep.mubr.f32.mxu1 %v2465_v2 }
 0x1c8   :  { %2302 = vmatmul.mubr.msk.f32.gmra.mrb[10].mxu1 %vm1868_vm6, %v1841_v1 }
 0x1c9   :  { %1957 = vmatprep.mubr.f32.mxu1 %v2465_v2 }
 0x1cc   :  { %2303 = vmatmul.mubr.msk.f32.gmra.mrb[12].mxu1 %vm1868_vm6, %v1842_v3 }
 0x1cd   :  { %1963 = vmatprep.mubr.f32.mxu1 %v2465_v2 }
 0x1d0   :  { %2304 = vmatmul.mubr.msk.f32.gmra.mrb[14].mxu1 %vm1868_vm6, %v1843_v4 }
 0x1d1   :  { %2082 = vmatprep.mubr.f32.mxu1 %v2465_v2 }
 0x297   :  { %v1947_v5 = vpop.f32.mrb[8].mxu1 }
 0x298   :  { %v1949_v28 = vpop.f32.mrb[9].mxu1  ;;  %v1948_v7 = vadd.f32 %v1947_v5, %v1851_v6 }
 0x299   :  { %v1950_v8 = vadd.f32 %v1949_v28, %v1851_v6 }
 0x29a   :  { %v1970_v12 = vmax.f32 %v1948_v7, 0.0 }
 0x29b   :  { %v1953_v26 = vpop.f32.mrb[10].mxu1  ;;  %v1971_v14 = vmax.f32 %v1950_v8, 0.0  ;;  %v2120_v8 = vpop.permute.xlu0 %2119 }
 0x29c   :  { %v1954_v9 = vadd.f32 %v1953_v26, %v1856_v33  ;;  %v1955_v10 = vpop.f32.mrb[11].mxu1 }
 0x29d   :  { %v1956_v11 = vadd.f32 %v1955_v10, %v1856_v33  ;;  %v2115_v33 = vld [vmem:[%s2974_s0 + $0x200] sm:$0x7] }
 0x29e   :  { %v1972_v13 = vmax.f32 %v1954_v9, 0.0 }
 0x29f   :  { %v1973_v15 = vmax.f32 %v1956_v11, 0.0  ;;  %v1959_v16 = vpop.f32.mrb[12].mxu1 }
 0x2a0   :  { %v2320_v17 = vpack.c.bf16 %v1972_v13, %v1970_v12  ;;  %v1961_v38 = vpop.f32.mrb[13].mxu1  ;;  %v1960_v19 = vadd.f32 %v1959_v16, %v1861_v18 }
 0x2a1   :  { %v2318_v52 = vpack.c.bf16 %v1973_v15, %v1971_v14  ;;  %v1962_v21 = vadd.f32 %v1961_v38, %v1861_v18 }
 0x2a2   :  { %v1974_v27 = vmax.f32 %v1960_v19, 0.0 }
 0x2a3   :  { %v1965_v22 = vpop.f32.mrb[14].mxu1  ;;  %2319 = vmatprep.subr.bf16.mxu1 %v2318_v52  ;;  %v1975_v32 = vmax.f32 %v1962_v21, 0.0 }
 0x2a4   :  { %v1966_v23 = vadd.f32 %v1965_v22, %v1866_v20  ;;  %v1967_v24 = vpop.f32.mrb[15].mxu1  ;;  %2321 = vmatpush1.bf16.msra.mxu1 %v2320_v17 }
 0x2a5   :  { %v1968_v25 = vadd.f32 %v1967_v24, %v1866_v20 }
 0x2a6   :  { %v1976_v29 = vmax.f32 %v1966_v23, 0.0 }
 0x2a7   :  { %v1977_v31 = vmax.f32 %v1968_v25, 0.0 }
 0x2a8   :  { %v2324_v34 = vpack.c.bf16 %v1976_v29, %v1974_v27 }
 0x2a9   :  { %v2322_v35 = vpack.c.bf16 %v1977_v31, %v1975_v32 }
 0x2ab   :  { %2323 = vmatprep.subr.bf16.mxu1 %v2322_v35 }
 0x2ac   :  { %2325 = vmatpush1.bf16.msra.mxu1 %v2324_v34 }
 0x2af   :  { %2305 = vmatmul.mubr.msk.f32.vlgmr.msra.gmra.mrb[16].mxu1 %vm1868_vm6, %v1978_v36 }
 0x2b0   :  { %2088 = vmatprep.mubr.f32.mxu1 %v2465_v2 }
 0x2b3   :  { %2306 = vmatmul.mubr.msk.f32.gmra.mrb[18].mxu1 %vm1868_vm6, %v1979_v37 }
 0x2b4   :  { %2094 = vmatprep.mubr.f32.mxu1 %v2465_v2 }
 0x2b7   :  { %2307 = vmatmul.mubr.msk.f32.gmra.mrb[20].mxu1 %vm1868_vm6, %v1980_v39 }
 0x2b8   :  { %2100 = vmatprep.mubr.f32.mxu1 %v2465_v2 }
 0x2bb   :  { %2308 = vmatmul.mubr.msk.f32.gmra.mrb[22].mxu1 %vm1868_vm6, %v1981_v40 }
 0x2bc   :  { %2189 = vmatprep.mubr.f32.mxu1 %v2465_v2 }
 0x382   :  { %v2084_v41 = vpop.f32.mrb[16].mxu1 }
 0x383   :  { %v2086_v44 = vpop.f32.mrb[17].mxu1  ;;  %v2085_v46 = vadd.f32 %v2084_v41, %v1989_v45 }
 0x384   :  { %v2087_v54 = vadd.f32 %v2086_v44, %v1989_v45 }
 0x385   :  { %v2107_v48 = vmax.f32 %v2085_v46, 0.0 }
 0x386   :  { %v2090_v55 = vpop.f32.mrb[18].mxu1  ;;  %v2108_v58 = vmax.f32 %v2087_v54, 0.0 }
 0x387   :  { %v2091_v56 = vadd.f32 %v2090_v55, %v1994_v49  ;;  %v2092_v42 = vpop.f32.mrb[19].mxu1 }
 0x388   :  { %v2093_v43 = vadd.f32 %v2092_v42, %v1994_v49 }
 0x389   :  { %v2109_v57 = vmax.f32 %v2091_v56, 0.0 }
 0x38a   :  { %v2110_v59 = vmax.f32 %v2093_v43, 0.0  ;;  %v2096_v60 = vpop.f32.mrb[20].mxu1 }
 0x38b   :  { %v2328_v30 = vpack.c.bf16 %v2109_v57, %v2107_v48  ;;  %v2098_v47 = vpop.f32.mrb[21].mxu1  ;;  %v2097_v2 = vadd.f32 %v2096_v60, %v1999_v61 }
 0x38c   :  { %v2326_v50 = vpack.c.bf16 %v2110_v59, %v2108_v58  ;;  %v2099_v62 = vadd.f32 %v2098_v47, %v1999_v61 }
 0x38d   :  { %v2111_v3 = vmax.f32 %v2097_v2, 0.0 }
 0x38e   :  { %v2102_v51 = vpop.f32.mrb[22].mxu1  ;;  %2327 = vmatprep.subr.bf16.mxu1 %v2326_v50  ;;  %v2112_v5 = vmax.f32 %v2099_v62, 0.0 }
 0x38f   :  { %v2103_v63 = vadd.f32 %v2102_v51, %v2004_v53  ;;  %v2104_v0 = vpop.f32.mrb[23].mxu1  ;;  %2329 = vmatpush1.bf16.msra.mxu1 %v2328_v30 }
 0x390   :  { %v2105_v1 = vadd.f32 %v2104_v0, %v2004_v53 }
 0x391   :  { %v2113_v4 = vmax.f32 %v2103_v63, 0.0 }
 0x392   :  { %v2114_v28 = vmax.f32 %v2105_v1, 0.0 }
 0x393   :  { %v2332_v6 = vpack.c.bf16 %v2113_v4, %v2111_v3 }
 0x394   :  { %v2330_v7 = vpack.c.bf16 %v2114_v28, %v2112_v5 }
 0x396   :  { %2331 = vmatprep.subr.bf16.mxu1 %v2330_v7 }
 0x397   :  { %2333 = vmatpush1.bf16.msra.mxu1 %v2332_v6 }
 0x39a   :  { %2309 = vmatmul.mubr.msk.f32.vlgmr.msra.gmra.mrb[24].mxu1 %vm1868_vm6, %v2115_v33 }
 0x46d   :  { %v2191_v26 = vpop.f32.mrb[24].mxu1 }
 0x46e   :  { %v2192_v9 = vadd.f32 %v2191_v26, %v2120_v8  ;;  %v2193_v10 = vpop.f32.mrb[25].mxu1 }
 0x46f   :  { %v2194_v11 = vadd.f32 %v2193_v10, %v2120_v8 }
 0x471   :  { %v2198_v12 = vcombine.low %v2192_v9, %v2194_v11 }
 0x473   :  { %2200 = vst [vmem:[#allocation2] sm:$0x77] %v2198_v12 }
 0x474   :  { %2452 = shalt.err (!%p2449_p4)
}
 0x475   :  { %s2453_s26 = scalar_lea.hbm %s2975_s1, 128 }
 0x476   :  { %p2454_p5 = scmp.ne.s32.totalorder %s2975_s1, %s2453_s26  ;;  %p2457_p6 = scmp.lt.u32.totalorder %s2453_s26, %s2975_s1 }
 0x478   :  { %p2459_p7 = pnand %p2457_p6, %p2454_p5 }
 0x47a   :  { %2462 = shalt.err (!%p2459_p7)
}
 0x47b   :  { %2210 = dma.vmem_to_hbm [thread:$0]  %s2208_s23, 128, %s2975_s1, [#allocation3]  }
 0x47c   :  { %2463 = dma.done.wait [#allocation3], 128  }
 0x47d   :  { %2464 = vsyncadd [#allocation3], 4294967168 }
 0x47e   :  { %2214 = vsyncpa [#allocation3], 1 }

</bundles_post_ra>
